<compile_context>
chip_gen: v7x
topology: tpu7x:2x2x1
jax: 0.10.0
libtpu: 0.0.40
codegen_flags: <defaults>
</compile_context>

<pallas_src>
import jax
import jax.numpy as jnp
from jax import lax
from jax.experimental import pallas as pl
from jax.experimental.pallas import tpu as pltpu


def _round_up(x, m):
    return ((x + m - 1) // m) * m


# ----------------------------------------------------------------------------
# Kernel 1: scoring  scores = sigmoid(X @ (W/100) + b/100)    (VPU lane reduce)
# ----------------------------------------------------------------------------
def _score_kernel(x_ref, w_ref, b_ref, s_ref):
    # x_ref: (TM, D) rows of X; w_ref: (1, D) pre-scaled weights (VPU broadcast)
    # b_ref: (1,) pre-scaled bias in SMEM; s_ref: (1, TM) lane-dense scores.
    x = x_ref[...].astype(jnp.float32)
    w = w_ref[...]                                # (1, D), resident
    logits = jnp.sum(x * w, axis=-1)              # (TM,) — lane reduce on XLU
    s_ref[...] = jax.nn.sigmoid(logits + b_ref[0])[None, :]


def compute_scores(X, W_scaled, b_scaled):
    N, D = X.shape
    # Keep one input tile <= ~4 MiB so double-buffering stays well under the
    # scoped-VMEM default on every chip (re-derived from D, not hardcoded).
    max_rows = max(128, (4 * 1024 * 1024) // (D * 4))
    TM = min(1024, (max_rows // 128) * 128)
    if N <= TM:
        TM = N                       # single tile: block == full array shape
        N_pad = N
    else:
        N_pad = _round_up(N, TM)     # TM multiple of 128 -> lane-dense blocks
        if N_pad != N:
            X = jnp.pad(X, ((0, N_pad - N), (0, 0)))

    scores = pl.pallas_call(
        _score_kernel,
        out_shape=jax.ShapeDtypeStruct((1, N_pad), jnp.float32),
        grid=(N_pad // TM,),
        in_specs=[
            pl.BlockSpec((TM, D), lambda i: (i, 0)),
            pl.BlockSpec((1, D), lambda i: (0, 0)),             # resident weights
            pl.BlockSpec(memory_space=pltpu.MemorySpace.SMEM),  # scalar bias
        ],
        out_specs=pl.BlockSpec((1, TM), lambda i: (0, i)),      # lane-dense scores
        compiler_params=pltpu.CompilerParams(
            dimension_semantics=("parallel",)),
    )(X, W_scaled, b_scaled)
    return scores[0, :N]


# ----------------------------------------------------------------------------
# Kernel 2: batched row gather + scale + fused column gather
#   new_X[i*B:(i+1)*B] = X[idx_block] * values_block
#   new_A[i*B:(i+1)*B] = A[idx_block, :] @ onehot(idx)        (MXU)
# ----------------------------------------------------------------------------
def _gather_kernel(idx_smem, idxvec_ref, val_ref, x_hbm, a_hbm,
                   newx_ref, newa_ref,
                   x_buf, a_buf, x_sems, a_sems, p_ref):
    i = pl.program_id(0)
    nsteps = pl.num_programs(0)
    B = x_buf.shape[1]
    N = a_buf.shape[2]
    kp = p_ref.shape[1]

    def start_fetch(step, slot):
        base = step * B
        for j in range(B):                       # static unroll, B small
            row = idx_smem[base + j]
            pltpu.make_async_copy(x_hbm.at[row], x_buf.at[slot, j],
                                  x_sems.at[slot, j]).start()
            pltpu.make_async_copy(a_hbm.at[row], a_buf.at[slot, j],
                                  a_sems.at[slot, j]).start()

    def wait_fetch(slot):
        for j in range(B):
            pltpu.make_async_copy(x_hbm.at[0], x_buf.at[slot, j],
                                  x_sems.at[slot, j]).wait()
            pltpu.make_async_copy(a_hbm.at[0], a_buf.at[slot, j],
                                  a_sems.at[slot, j]).wait()

    @pl.when(i == 0)
    def _():
        start_fetch(0, 0)
        # One-hot column selector P[n, j] = (n == idx[j]); built once while the
        # first DMAs are in flight, kept resident in VMEM scratch: the column
        # gather becomes an MXU matmul and no [k, N] intermediate hits HBM.
        # TODO(synk): for very large N*k this selector should be tiled along k.
        rows = lax.broadcasted_iota(jnp.int32, (N, kp), 0)
        p_ref[...] = (rows == idxvec_ref[...]).astype(p_ref.dtype)

    slot = lax.rem(i, 2)

    # prefetch next step's rows into the other buffer before waiting on ours
    @pl.when(i + 1 < nsteps)
    def _():
        start_fetch(i + 1, 1 - slot)

    wait_fetch(slot)

    newx_ref[...] = (x_buf[slot] * val_ref[...]).astype(newx_ref.dtype)
    newa_ref[...] = jnp.dot(a_buf[slot], p_ref[...],
                            preferred_element_type=jnp.float32
                            ).astype(newa_ref.dtype)


def gather_pool(X, A, idx, values, k):
    N, D = X.shape
    # Amortize per-grid-step overhead for large k; avoid padding waste for small k.
    B = 8 if k <= 128 else 32
    k_pad = _round_up(max(k, 1), B)
    idx_pad = jnp.zeros((k_pad,), jnp.int32).at[:k].set(idx)
    idx_vec = idx_pad.reshape(1, k_pad)
    val_col = jnp.zeros((k_pad, 1), X.dtype).at[:k, 0].set(values.astype(X.dtype))

    grid_spec = pltpu.PrefetchScalarGridSpec(
        num_scalar_prefetch=1,                       # idx -> SMEM (DMA addressing)
        grid=(k_pad // B,),
        in_specs=[
            pl.BlockSpec((1, k_pad), lambda i, idx_s: (0, 0)),  # idx lanes, resident
            pl.BlockSpec((B, 1), lambda i, idx_s: (i, 0)),      # top-k values column
            pl.BlockSpec(memory_space=pl.ANY),                   # X stays in HBM
            pl.BlockSpec(memory_space=pl.ANY),                   # A stays in HBM
        ],
        out_specs=[
            pl.BlockSpec((B, D), lambda i, idx_s: (i, 0)),
            pl.BlockSpec((B, k_pad), lambda i, idx_s: (i, 0)),
        ],
        scratch_shapes=[
            pltpu.VMEM((2, B, D), X.dtype),          # double-buffered X rows
            pltpu.VMEM((2, B, N), A.dtype),          # double-buffered A rows
            pltpu.SemaphoreType.DMA((2, B)),
            pltpu.SemaphoreType.DMA((2, B)),
            pltpu.VMEM((N, k_pad), A.dtype),         # one-hot column selector
        ],
    )
    new_X, new_A = pl.pallas_call(
        _gather_kernel,
        grid_spec=grid_spec,
        out_shape=(
            jax.ShapeDtypeStruct((k_pad, D), X.dtype),
            jax.ShapeDtypeStruct((k_pad, k_pad), A.dtype),
        ),
        # NOTE: stays "arbitrary" — the manual double-buffer carries state
        # across grid steps, which is only safe under sequential execution.
        compiler_params=pltpu.CompilerParams(
            dimension_semantics=("arbitrary",)),
    )(idx_pad, idx_vec, val_col, X, A)
    return new_X[:k], new_A[:k, :k]


# ----------------------------------------------------------------------------
# GraphPool forward
# ----------------------------------------------------------------------------
def graph_pool(A, X, W, b, k_ratio):
    """Equivalent of GraphPool.forward(A, X).

    A: [N, N] float32, X: [N, in_dim] float32, W: [1, in_dim], b: [1].
    Returns (new_A [k,k], new_X [k,in_dim], idx [k]).
    """
    num_nodes = A.shape[0]
    k = max(1, int(k_ratio * num_nodes))          # clamp k >= 1

    # fold the /100 into the (tiny) projection parameters on the host
    W_s = (jnp.asarray(W, jnp.float32).reshape(1, -1) * 0.01)
    b_s = (jnp.asarray(b, jnp.float32).reshape(1) * 0.01)

    scores = compute_scores(X, W_s, b_s)          # [N], Pallas kernel

    # TODO(synk): top-k selection stays in jax.lax.top_k — no clean Pallas TPU
    # top-k primitive.
    values, idx = jax.lax.top_k(scores, k)
    idx = idx.astype(jnp.int32)

    new_X, new_A = gather_pool(X, A, idx, values, k)   # Pallas kernel (fused)
    return new_A, new_X, idx


if __name__ == "__main__":
    key = jax.random.PRNGKey(0)
    k_a, k_x, k_w, k_b = jax.random.split(key, 4)

    N, in_dim = 16, 32
    k_ratio = 0.5

    A = jax.random.uniform(k_a, (N, N), dtype=jnp.float32)
    X = jax.random.normal(k_x, (N, in_dim), dtype=jnp.float32)
    # nn.Linear(in_dim, 1): weight [1, in_dim], bias [1]
    W = jax.random.normal(k_w, (1, in_dim), dtype=jnp.float32) / jnp.sqrt(in_dim)
    b = jax.random.normal(k_b, (1,), dtype=jnp.float32) * 0.01

    new_A, new_X, idx = graph_pool(A, X, W, b, k_ratio)
    jax.block_until_ready((new_A, new_X, idx))

    kk = max(1, int(k_ratio * N))
    assert new_A.shape == (kk, kk)
    assert new_X.shape == (kk, in_dim)
    assert idx.shape == (kk,)

    # reference check against plain JAX (PyTorch-equivalent math)
    scores_ref = jax.nn.sigmoid((X @ W[0] + b[0]) / 100.0)
    vals_r, idx_r = jax.lax.top_k(scores_ref, kk)
    newX_r = X[idx_r] * vals_r[:, None]
    newA_r = A[idx_r][:, idx_r]
    assert jnp.array_equal(idx, idx_r.astype(jnp.int32))
    assert jnp.allclose(new_X, newX_r, rtol=1e-5, atol=1e-5)
    assert jnp.allclose(new_A, newA_r, rtol=1e-5, atol=1e-5)

    print("KERNEL_OK")
</pallas_src>

<mosaic_0001>
module attributes {stable_mosaic.version = 11 : i64} {
  func.func @_score_kernel(%arg0: i32, %arg1: memref<16x32xf32, #tpu.memory_space<vmem>>, %arg2: memref<1x32xf32, #tpu.memory_space<vmem>>, %arg3: memref<1xf32, #tpu.memory_space<smem>>, %arg4: memref<1x16xf32, #tpu.memory_space<vmem>>) attributes {dimension_semantics = [#tpu.dimension_semantics<parallel>], iteration_bounds = array<i64: 1>, scalar_prefetch = 0 : i64, scratch_operands = 0 : i64, tpu.core_type = #tpu.core_type<tc>, window_params = [{transform_indices = @transform_0, window_bounds = array<i64: 16, 32>}, {pipeline_mode = #tpu.pipeline_mode<synchronous>, transform_indices = @transform_1, window_bounds = array<i64: 1, 32>}, {transform_indices = @transform_2, window_bounds = array<i64: 1>}, {transform_indices = @transform_3, window_bounds = array<i64: 1, 16>}]} {
    %c0 = arith.constant 0 : index
    %c0_0 = arith.constant 0 : index
    %0 = vector.load %arg1[%c0, %c0_0] : memref<16x32xf32, #tpu.memory_space<vmem>>, vector<16x32xf32>
    %c0_1 = arith.constant 0 : index
    %c0_2 = arith.constant 0 : index
    %1 = vector.load %arg2[%c0_1, %c0_2] : memref<1x32xf32, #tpu.memory_space<vmem>>, vector<1x32xf32>
    %2 = vector.broadcast %1 : vector<1x32xf32> to vector<16x32xf32>
    %3 = arith.mulf %0, %2 : vector<16x32xf32>
    %cst = arith.constant dense<0.000000e+00> : vector<16xf32>
    %4 = vector.multi_reduction <add>, %3, %cst [1] : vector<16x32xf32> to vector<16xf32>
    %c0_3 = arith.constant 0 : index
    %5 = memref.load %arg3[%c0_3] : memref<1xf32, #tpu.memory_space<smem>>
    %6 = vector.broadcast %5 : f32 to vector<16xf32>
    %7 = arith.addf %4, %6 : vector<16xf32>
    %8 = arith.negf %7 : vector<16xf32>
    %9 = math.exp %8 : vector<16xf32>
    %cst_4 = arith.constant 1.000000e+00 : f32
    %10 = vector.broadcast %cst_4 : f32 to vector<16xf32>
    %11 = arith.addf %10, %9 : vector<16xf32>
    %12 = arith.divf %10, %11 : vector<16xf32>
    %13 = vector.shape_cast %12 : vector<16xf32> to vector<1x16xf32>
    %c0_5 = arith.constant 0 : index
    %c0_6 = arith.constant 0 : index
    %14 = vector.load %arg4[%c0_5, %c0_6] : memref<1x16xf32, #tpu.memory_space<vmem>>, vector<1x16xf32>
    tpu.vector_store %arg4[%c0_5, %c0_6], %13 {strides = array<i32>} : memref<1x16xf32, #tpu.memory_space<vmem>>, vector<1x16xf32>,
    return
  }
  func.func @transform_0(%arg0: i32) -> (i32, i32) {
    %c0_i32 = arith.constant 0 : i32
    %c0_i32_0 = arith.constant 0 : i32
    return %arg0, %c0_i32 : i32, i32
  }
  func.func @transform_1(%arg0: i32) -> (i32, i32) {
    %c0_i32 = arith.constant 0 : i32
    %c0_i32_0 = arith.constant 0 : i32
    %c0_i32_1 = arith.constant 0 : i32
    return %c0_i32, %c0_i32_0 : i32, i32
  }
  func.func @transform_2(%arg0: i32) -> i32 {
    %c0_i32 = arith.constant 0 : i32
    %c0_i32_0 = arith.constant 0 : i32
    return %c0_i32 : i32
  }
  func.func @transform_3(%arg0: i32) -> (i32, i32) {
    %c0_i32 = arith.constant 0 : i32
    %c0_i32_0 = arith.constant 0 : i32
    return %c0_i32, %arg0 : i32, i32
  }
}

</mosaic_0001>

<bundles_post_ra>
// kernel: tpu_custom_call.1
= control target key start
LH: loop header
LB: loop body
LE: loop exit
PB: predicated region body
PF: predicated region fallthrough
CT: control target
= control target key end

     0   :  { %9 = vsyncpa [#allocation4], 0  ;;  %s214_s0 = inlined_call_operand.hbm [shape: f32[16,32], index: 0, kind: input, shape index: {}]   ;;  %s215_s1 = inlined_call_operand.vmem [shape: f32[1,32], index: 1, kind: input, shape index: {}]   ;;  %s216_s2 = inlined_call_operand.<no memory space> [shape: f32[1], index: 2, kind: input, shape index: {}]   ;;  %s217_s3 = inlined_call_operand.hbm [shape: f32[1,16], index: 3, kind: output, shape index: {}]  }
   0x1   :  { %10 = vsyncpa [#allocation5], 0  ;;  %s160_s12 = smov [#allocation3]   ;;  %s112_s16 = scalar_lea.hbm %s214_s0, 256 }
   0x2   :  { %s16_s13 = sshll.u32 %s160_s12, 4  ;;  %p113_p0 = scmp.ne.s32.totalorder %s214_s0, %s112_s16  ;;  %s17_s13 = int_to_ptr.vmem [resolvable:$true] %s16_s13 }
   0x3   :  { %p116_p1 = scmp.lt.u32.totalorder %s112_s16, %s214_s0 }
   0x5   :  { %p118_p2 = pnand %p116_p1, %p113_p0 }
   0x7   :  { %121 = shalt.err (!%p118_p2)
}
   0x8   :  { %s122_s21 = scalar_lea.vmem %s17_s13, 256  ;;  %p127_p4 = scmp.lt.s32.totalorder %s17_s13, %s17_s13 }
   0x9   :  { %p123_p3 = scmp.ne.s32.totalorder %s17_s13, %s122_s21  ;;  %p128_p5 = scmp.lt.s32.totalorder %s122_s21, %s122_s21 }
   0xb   :  { %p129_p6 = por %p128_p5, %p127_p4 }
   0xd   :  { %p130_p7 = pnand %p129_p6, %p123_p3 }
   0xf   :  { %133 = shalt.err (!%p130_p7)
}
  0x10   :  { %s161_s22 = smov 128   ;;  %s162_s23 = smov 8  }
  0x11   :  { %22 = dma.hbm_to_vmem [thread:$0]  %s214_s0, 256, %s17_s13, [#allocation4], %s161_s22, %s161_s22, %s162_s23  }
  0x12   :  { %156 = dma.done.wait [#allocation4], 256  }
  0x13   :  { %157 = vsyncadd [#allocation4], 4294967040  ;;  %v30_v0 = vld [vmem:[#allocation3] sm:$0xff]  ;;  %vm41_vm0 = vcmask 261120   ;;  %v31_v2 = vld [vmem:[#allocation3 + $0x8] sm:$0xff]  ;;  %v49_v7 = vstv %s216_s2  ;;  %v66_v17 = vlaneseq  ;;  %s163_s0 = smov [#allocation6]  }
  0x14   :  { %v97_v1 = vld [vmem:[%s215_s1] ss:$0 sm:$0xff]  ;;  %s88_s1 = sshll.u32 %s163_s0, 4  ;;  %vm77_vm1 = vcmask 130112   ;;  %vm80_vm2 = vcmask 122880   ;;  %s89_s1 = int_to_ptr.vmem [resolvable:$true] %s88_s1 }
  0x15   :  { %v39_v3 = vmul.f32 %v97_v1, %v30_v0  ;;  %v40_v4 = vmul.f32 %v97_v1, %v31_v2  ;;  %v67_v19 = vand.u32 127, %v66_v17  ;;  %v69_v20 = vshrl.u32 %v66_v17, 7  ;;  %s134_s2 = scalar_lea.vmem %s89_s1, 16  ;;  %s138_s30 = scalar_lea.vmem %s89_s1, 32 }
  0x16   :  { %p135_p8 = scmp.ne.s32.totalorder %s89_s1, %s134_s2  ;;  %p139_p9 = scmp.lt.s32.totalorder %s89_s1, %s89_s1 }
  0x17   :  { %v42_v5 = vsel %vm41_vm0, %v39_v3, 0.0  ;;  %v45_v6 = vsel %vm41_vm0, %v40_v4, 0.0  ;;  %v72_v21 = vadd.s32 4294967288, %v67_v19  ;;  %v70_v22 = vsub.s32 %v67_v19, %v69_v20  ;;  %p140_p10 = scmp.lt.s32.totalorder %s138_s30, %s134_s2 }
  0x18   :  { %43 = vadd.xlane.f32.xlu0 %v42_v5 }
  0x19   :  { %v75_v23 = vsub.s32 %v72_v21, %v69_v20  ;;  %p141_p11 = por %p140_p10, %p139_p9 }
  0x1b   :  { %p142_p12 = pnand %p141_p11, %p135_p8 }
  0x1c   :  { %46 = vadd.xlane.f32.xlu0 %v45_v6 }
  0xa5   :  { %v44_v8 = vpop.xlane.xlu0 %43 }
  0xa6   :  { %v50_v9 = vadd.f32 %v49_v7, %v44_v8 }
  0xa8   :  { %v98_v10 = vmul.f32 -1.442695, %v50_v9 }
  0xa9   :  { %v47_v11 = vpop.xlane.xlu0 %46 }
  0xaa   :  { %104 = vpow2.f32 %v98_v10  ;;  %v51_v12 = vadd.f32 %v49_v7, %v47_v11 }
  0xac   :  { %v99_v13 = vmul.f32 -1.442695, %v51_v12 }
  0xae   :  { %106 = vpow2.f32 %v99_v13 }
  0xb4   :  { %v105_v14 = vpop.eup %104 }
  0xb5   :  { %v58_v15 = vadd.f32 1.0, %v105_v14 }
  0xb7   :  { %108 = vrcp.f32 %v58_v15 }
  0xb8   :  { %v107_v16 = vpop.eup %106 }
  0xb9   :  { %v59_v18 = vadd.f32 1.0, %v107_v16 }
  0xbb   :  { %110 = vrcp.f32 %v59_v18 }
  0xc1   :  { %v109_v24 = vpop.eup %108 }
  0xc2   :  { %v71_v26 = vrot.slane %v109_v24, %v70_v22 }
  0xc5   :  { %v111_v25 = vpop.eup %110 }
  0xc6   :  { %v76_v27 = vrot.slane %v111_v25, %v75_v23 }
  0xc8   :  { %v78_v28 = vsel %vm77_vm1, %v76_v27, %v71_v26 }
  0xc9   :  { %81 = vst.msk [vmem:[#allocation6] sm:$0x1] %vm80_vm2, %v78_v28 }
  0xca   :  { %145 = shalt.err (!%p142_p12)
}
  0xcb   :  { %s146_s6 = scalar_lea.hbm %s217_s3, 16 }
  0xcc   :  { %p147_p13 = scmp.ne.s32.totalorder %s217_s3, %s146_s6  ;;  %p150_p0 = scmp.lt.u32.totalorder %s146_s6, %s217_s3 }
  0xce   :  { %p152_p1 = pnand %p150_p0, %p147_p13 }
  0xd0   :  { %155 = shalt.err (!%p152_p1)
}
  0xd1   :  { %91 = dma.vmem_to_hbm [thread:$0]  %s89_s1, 16, %s217_s3, [#allocation5]  }
  0xd2   :  { %158 = dma.done.wait [#allocation5], 16  }
  0xd3   :  { %159 = vsyncadd [#allocation5], 4294967280 }
  0xd4   :  { %95 = vsyncpa [#allocation4], 1 }
  0xd5   :  { %96 = vsyncpa [#allocation5], 1 }

</bundles_post_ra>
